<compile_context>
chip_gen: v5e
topology: v5e:2x2
jax: 0.10.0
libtpu: 0.0.40
codegen_flags: <defaults>
</compile_context>

<pallas_src>
import functools

import jax
import jax.numpy as jnp
from jax.experimental import pallas as pl
from jax.experimental.pallas import tpu as pltpu

DATA_RANGE = 2.0
LANE = 128


def _round_up(a: int, b: int) -> int:
    return (a + b - 1) // b * b


def _psnr_kernel(x_ref, y_ref, o_ref, acc_ref, *, n_obs: float):
    # x_ref, y_ref: (tn, td) native dtype; o_ref: (tn, 1) f32;
    # acc_ref: (tn, 128) f32 scratch, resident across the reduction axis.
    k = pl.program_id(1)

    @pl.when(k == 0)
    def _():
        acc_ref[...] = jnp.zeros_like(acc_ref)

    x = x_ref[...].astype(jnp.float32)
    y = y_ref[...].astype(jnp.float32)
    diff = x - y
    sq = diff * diff                                        # (tn, td) f32

    # Fold td lanes down to 128 with pure VPU adds (statically unrolled,
    # lane-aligned slices) -> no per-step XLU cross-lane reduction.
    td = x_ref.shape[1]
    partial = acc_ref[...]
    for j in range(td // LANE):
        partial = partial + sq[:, j * LANE:(j + 1) * LANE]
    acc_ref[...] = partial

    @pl.when(k == pl.num_programs(1) - 1)
    def _():
        sse = jnp.sum(acc_ref[...], axis=-1, keepdims=True)  # (tn, 1)
        mse = sse * jnp.float32(1.0 / n_obs)
        # torchmetrics: psnr = 20*log10(data_range) - 10*log10(mse)
        psnr = (20.0 * jnp.log10(jnp.float32(DATA_RANGE))
                - 10.0 * jnp.log10(mse))
        o_ref[...] = psnr


def psnr(pred: jax.Array, target: jax.Array) -> jax.Array:
    """Per-sample PSNR over dims (1,2,3) of NCHW inputs; returns shape (N,)."""
    assert pred.shape == target.shape
    n = pred.shape[0]
    d = 1
    for s in pred.shape[1:]:
        d *= s

    # Mirror `grountruth.to(input.dtype)`; keep the native dtype in HBM
    # (the f32 cast happens on the VPU inside the kernel, where it is free).
    x = pred.reshape(n, d)
    y = target.astype(pred.dtype).reshape(n, d)
    itemsize = jnp.dtype(pred.dtype).itemsize

    # Batch tile: full-extent when small, else a multiple of 8 that divides N.
    if n <= 128 or n % 8 != 0:
        tn = n
    else:
        tn = 128
        while n % tn:
            tn -= 8

    # Reduction tile: lane-dense, sized so the double-buffered working set
    # (2 inputs x 2 pipeline buffers) stays comfortably inside scoped VMEM
    # on every generation (incl. v7x's smaller VMEM).
    td = 2048
    vmem_budget = 16 * 1024 * 1024
    while td > LANE and 4 * tn * td * itemsize > vmem_budget:
        td //= 2
    td = min(td, _round_up(d, LANE))

    # Pad the reduction dim so every tile is fully in-bounds.
    d_pad = _round_up(d, td)
    if d_pad != d:
        x = jnp.pad(x, ((0, 0), (0, d_pad - d)))
        y = jnp.pad(y, ((0, 0), (0, d_pad - d)))

    grid = (n // tn, d_pad // td)

    out = pl.pallas_call(
        functools.partial(_psnr_kernel, n_obs=float(d)),
        out_shape=jax.ShapeDtypeStruct((n, 1), jnp.float32),
        grid=grid,
        in_specs=[
            pl.BlockSpec((tn, td), lambda i, k: (i, k)),
            pl.BlockSpec((tn, td), lambda i, k: (i, k)),
        ],
        out_specs=pl.BlockSpec((tn, 1), lambda i, k: (i, 0)),
        scratch_shapes=[pltpu.VMEM((tn, LANE), jnp.float32)],
        compiler_params=pltpu.CompilerParams(
            dimension_semantics=("parallel", "arbitrary")
        ),
    )(x, y)

    result = out[:, 0]
    if jnp.issubdtype(pred.dtype, jnp.floating):
        result = result.astype(pred.dtype)
    return result


if __name__ == "__main__":
    key = jax.random.PRNGKey(0)
    k1, k2 = jax.random.split(key)
    # NCHW, values roughly in [-1, 1] consistent with data_range=2.0
    x = jax.random.uniform(k1, (2, 4, 16, 16), jnp.float32, minval=-1.0, maxval=1.0)
    gt = jax.random.uniform(k2, (2, 4, 16, 16), jnp.float32, minval=-1.0, maxval=1.0)

    result = psnr(x, gt)
    jax.block_until_ready(result)

    # Reference check in plain JAX.
    mse_ref = jnp.mean((x - gt) ** 2, axis=(1, 2, 3))
    ref = 10.0 * jnp.log10(DATA_RANGE ** 2 / mse_ref)
    assert result.shape == (2,)
    assert jnp.allclose(result, ref, rtol=1e-5, atol=1e-5)

    print("KERNEL_OK")
</pallas_src>

<mosaic_0001>
module attributes {stable_mosaic.version = 11 : i64} {
  func.func @_psnr_kernel(%arg0: i32, %arg1: i32, %arg2: memref<2x1024xf32, #tpu.memory_space<vmem>>, %arg3: memref<2x1024xf32, #tpu.memory_space<vmem>>, %arg4: memref<2x1xf32, #tpu.memory_space<vmem>>, %arg5: memref<2x128xf32, #tpu.memory_space<vmem>>) attributes {dimension_semantics = [#tpu.dimension_semantics<parallel>, #tpu.dimension_semantics<arbitrary>], iteration_bounds = array<i64: 1, 1>, scalar_prefetch = 0 : i64, scratch_operands = 1 : i64, tpu.core_type = #tpu.core_type<tc>, window_params = [{transform_indices = @transform_0, window_bounds = array<i64: 2, 1024>}, {transform_indices = @transform_1, window_bounds = array<i64: 2, 1024>}, {transform_indices = @transform_2, window_bounds = array<i64: 2, 1>}]} {
    %c0_i32 = arith.constant 0 : i32
    %0 = arith.cmpi eq, %arg1, %c0_i32 : i32
    %1 = arith.extui %0 : i1 to i32
    %c0_i32_0 = arith.constant 0 : i32
    %2 = arith.cmpi ne, %1, %c0_i32_0 : i32
    scf.if %2 {
      %cst = arith.constant 0.000000e+00 : f32
      %28 = vector.broadcast %cst : f32 to vector<2x128xf32>
      %c0_10 = arith.constant 0 : index
      %c0_11 = arith.constant 0 : index
      %29 = vector.load %arg5[%c0_10, %c0_11] : memref<2x128xf32, #tpu.memory_space<vmem>>, vector<2x128xf32>
      tpu.vector_store %arg5[%c0_10, %c0_11], %28 {strides = array<i32>} : memref<2x128xf32, #tpu.memory_space<vmem>>, vector<2x128xf32>,
    } else {
    }
    %c0 = arith.constant 0 : index
    %c0_1 = arith.constant 0 : index
    %3 = vector.load %arg2[%c0, %c0_1] : memref<2x1024xf32, #tpu.memory_space<vmem>>, vector<2x1024xf32>
    %c0_2 = arith.constant 0 : index
    %c0_3 = arith.constant 0 : index
    %4 = vector.load %arg3[%c0_2, %c0_3] : memref<2x1024xf32, #tpu.memory_space<vmem>>, vector<2x1024xf32>
    %5 = arith.subf %3, %4 : vector<2x1024xf32>
    %6 = arith.mulf %5, %5 : vector<2x1024xf32>
    %c0_4 = arith.constant 0 : index
    %c0_5 = arith.constant 0 : index
    %7 = vector.load %arg5[%c0_4, %c0_5] : memref<2x128xf32, #tpu.memory_space<vmem>>, vector<2x128xf32>
    %8 = vector.extract_strided_slice %6 {offsets = [0, 0], sizes = [2, 128], strides = [1, 1]} : vector<2x1024xf32> to vector<2x128xf32>
    %9 = arith.addf %7, %8 : vector<2x128xf32>
    %10 = vector.extract_strided_slice %6 {offsets = [0, 128], sizes = [2, 128], strides = [1, 1]} : vector<2x1024xf32> to vector<2x128xf32>
    %11 = arith.addf %9, %10 : vector<2x128xf32>
    %12 = vector.extract_strided_slice %6 {offsets = [0, 256], sizes = [2, 128], strides = [1, 1]} : vector<2x1024xf32> to vector<2x128xf32>
    %13 = arith.addf %11, %12 : vector<2x128xf32>
    %14 = vector.extract_strided_slice %6 {offsets = [0, 384], sizes = [2, 128], strides = [1, 1]} : vector<2x1024xf32> to vector<2x128xf32>
    %15 = arith.addf %13, %14 : vector<2x128xf32>
    %16 = vector.extract_strided_slice %6 {offsets = [0, 512], sizes = [2, 128], strides = [1, 1]} : vector<2x1024xf32> to vector<2x128xf32>
    %17 = arith.addf %15, %16 : vector<2x128xf32>
    %18 = vector.extract_strided_slice %6 {offsets = [0, 640], sizes = [2, 128], strides = [1, 1]} : vector<2x1024xf32> to vector<2x128xf32>
    %19 = arith.addf %17, %18 : vector<2x128xf32>
    %20 = vector.extract_strided_slice %6 {offsets = [0, 768], sizes = [2, 128], strides = [1, 1]} : vector<2x1024xf32> to vector<2x128xf32>
    %21 = arith.addf %19, %20 : vector<2x128xf32>
    %22 = vector.extract_strided_slice %6 {offsets = [0, 896], sizes = [2, 128], strides = [1, 1]} : vector<2x1024xf32> to vector<2x128xf32>
    %23 = arith.addf %21, %22 : vector<2x128xf32>
    %c0_6 = arith.constant 0 : index
    %c0_7 = arith.constant 0 : index
    %24 = vector.load %arg5[%c0_6, %c0_7] : memref<2x128xf32, #tpu.memory_space<vmem>>, vector<2x128xf32>
    tpu.vector_store %arg5[%c0_6, %c0_7], %23 {strides = array<i32>} : memref<2x128xf32, #tpu.memory_space<vmem>>, vector<2x128xf32>,
    %c0_i32_8 = arith.constant 0 : i32
    %25 = arith.cmpi eq, %arg1, %c0_i32_8 : i32
    %26 = arith.extui %25 : i1 to i32
    %c0_i32_9 = arith.constant 0 : i32
    %27 = arith.cmpi ne, %26, %c0_i32_9 : i32
    scf.if %27 {
      %c0_10 = arith.constant 0 : index
      %c0_11 = arith.constant 0 : index
      %28 = vector.load %arg5[%c0_10, %c0_11] : memref<2x128xf32, #tpu.memory_space<vmem>>, vector<2x128xf32>
      %cst = arith.constant dense<0.000000e+00> : vector<2xf32>
      %29 = vector.multi_reduction <add>, %28, %cst [1] : vector<2x128xf32> to vector<2xf32>
      %30 = vector.shape_cast %29 : vector<2xf32> to vector<2x1xf32>
      %cst_12 = arith.constant 9.765625E-4 : f32
      %31 = vector.broadcast %cst_12 : f32 to vector<2x1xf32>
      %32 = arith.mulf %30, %31 : vector<2x1xf32>
      %cst_13 = arith.constant 2.000000e+00 : f32
      %33 = math.log %cst_13 : f32
      %cst_14 = arith.constant 0.434294492 : f32
      %34 = arith.mulf %33, %cst_14 : f32
      %cst_15 = arith.constant 2.000000e+01 : f32
      %35 = arith.mulf %cst_15, %34 : f32
      %36 = math.log %32 : vector<2x1xf32>
      %cst_16 = arith.constant 0.434294492 : f32
      %37 = vector.broadcast %cst_16 : f32 to vector<2x1xf32>
      %38 = arith.mulf %36, %37 : vector<2x1xf32>
      %cst_17 = arith.constant 1.000000e+01 : f32
      %39 = vector.broadcast %cst_17 : f32 to vector<2x1xf32>
      %40 = arith.mulf %39, %38 : vector<2x1xf32>
      %41 = vector.broadcast %35 : f32 to vector<2x1xf32>
      %42 = arith.subf %41, %40 : vector<2x1xf32>
      %c0_18 = arith.constant 0 : index
      %c0_19 = arith.constant 0 : index
      %43 = vector.load %arg4[%c0_18, %c0_19] : memref<2x1xf32, #tpu.memory_space<vmem>>, vector<2x1xf32>
      tpu.vector_store %arg4[%c0_18, %c0_19], %42 {strides = array<i32>} : memref<2x1xf32, #tpu.memory_space<vmem>>, vector<2x1xf32>,
    } else {
    }
    return
  }
  func.func @transform_0(%arg0: i32, %arg1: i32) -> (i32, i32) {
    %c0_i32 = arith.constant 0 : i32
    return %arg0, %arg1 : i32, i32
  }
  func.func @transform_1(%arg0: i32, %arg1: i32) -> (i32, i32) {
    %c0_i32 = arith.constant 0 : i32
    return %arg0, %arg1 : i32, i32
  }
  func.func @transform_2(%arg0: i32, %arg1: i32) -> (i32, i32) {
    %c0_i32 = arith.constant 0 : i32
    %c0_i32_0 = arith.constant 0 : i32
    return %arg0, %c0_i32 : i32, i32
  }
}

</mosaic_0001>

<bundles_post_ra>
// kernel: tpu_custom_call.1
= control target key start
LH: loop header
LB: loop body
LE: loop exit
PB: predicated region body
PF: predicated region fallthrough
CT: control target
= control target key end

     0   :  { %7 = vsyncpa [#allocation4], 0  ;;  %s188_s0 = inlined_call_operand.hbm [shape: f32[2,1024], index: 0, kind: input, shape index: {}]   ;;  %s189_s1 = inlined_call_operand.hbm [shape: f32[2,1024], index: 1, kind: input, shape index: {}]   ;;  %s190_s2 = inlined_call_operand.vmem [shape: f32[2,1], index: 2, kind: output, shape index: {}]  }
   0x1   :  { %s14_s11 = sshll.u32 %s188_s0, 4  ;;  %s15_s11 = int_to_ptr.hbm [resolvable:$true] %s14_s11 }
   0x2   :  { %8 = vsyncpa [#allocation6], 0  ;;  %s161_s12 = smov [#allocation3]   ;;  %s25_s16 = sshll.u32 %s189_s1, 4  ;;  %s26_s16 = int_to_ptr.hbm [resolvable:$true] %s25_s16 }
   0x3   :  { %s16_s13 = sshll.u32 %s161_s12, 4  ;;  %s162_s17 = smov [#allocation5]   ;;  %s17_s13 = int_to_ptr.vmem [resolvable:$true] %s16_s13 }
   0x4   :  { %19 = dma.hbm_to_vmem [thread:$0]  %s15_s11, 256, %s17_s13, [#allocation4]  }
   0x5   :  { %s27_s18 = sshll.u32 %s162_s17, 4  ;;  %s28_s18 = int_to_ptr.vmem [resolvable:$true] %s27_s18 }
   0x6   :  { %30 = dma.hbm_to_vmem [thread:$0]  %s26_s16, 256, %s28_s18, [#allocation6]  }
   0x7   :  { %157 = dma.done.wait [#allocation4], 256  }
   0x8   :  { %158 = vsyncadd [#allocation4], 4294967040 }
   0x9   :  { %159 = dma.done.wait [#allocation6], 256  }
   0xa   :  { %160 = vsyncadd [#allocation6], 4294967040  ;;  %v163_v0 = vmov 0.0   ;;  %v44_v1 = vld [vmem:[#allocation3] sm:$0xff]  ;;  %v46_v2 = vld [vmem:[#allocation5] sm:$0xff]  ;;  %vm86_vm0 = vcmask 1041408  }
   0xb   :  { %43 = vst [vmem:[#allocation2] sm:$0x3] %v163_v0  ;;  %v48_v3 = vsub.f32 %v44_v1, %v46_v2  ;;  %v45_v6 = vld [vmem:[#allocation3 + $0x8] sm:$0xff]  ;;  %v47_v7 = vld [vmem:[#allocation5 + $0x8] sm:$0xff]  ;;  %vm96_vm1 = vcmask 1024  }
   0xc   :  { %v49_v9 = vsub.f32 %v45_v6, %v47_v7 }
   0xd   :  { %v50_v4 = vmul.f32 %v48_v3, %v48_v3 }
   0xe   :  { %v51_v11 = vmul.f32 %v49_v9, %v49_v9 }
   0xf   :  { %55 = vst [vmem:[#allocation1] ss:$4 sm:$0xff] %v50_v4 }
  0x12   :  { %v52_v10 = vld [vmem:[#allocation2] sm:$0x3] }
  0x13   :  { %v53_v12 = vadd.f32 %v52_v10, %v50_v4 }
  0x16   :  { %v56_v5 = vld.sshfl [vmem:[#allocation1 + $0x8] sm:$0xff pattern:$0x73625140] }
  0x17   :  { %59 = vst [vmem:[#allocation1] ss:$4 sm:$0xff] %v50_v4  ;;  %v58_v14 = vadd.f32 %v56_v5, %v53_v12 }
  0x1e   :  { %v60_v8 = vld.sshfl [vmem:[#allocation1 + $0x10] sm:$0xff pattern:$0x73625140] }
  0x1f   :  { %63 = vst [vmem:[#allocation1] ss:$4 sm:$0xff] %v50_v4  ;;  %v62_v15 = vadd.f32 %v60_v8, %v58_v14 }
  0x26   :  { %v64_v13 = vld.sshfl [vmem:[#allocation1 + $0x18] sm:$0xff pattern:$0x73625140] }
  0x27   :  { %69 = vst [vmem:[#allocation1] ss:$4 sm:$0xff] %v51_v11  ;;  %v66_v17 = vadd.f32 %v64_v13, %v62_v15 }
  0x29   :  { %v67_v18 = vadd.f32 %v66_v17, %v51_v11 }
  0x2e   :  { %v70_v16 = vld.sshfl [vmem:[#allocation1 + $0x8] sm:$0xff pattern:$0x73625140] }
  0x2f   :  { %73 = vst [vmem:[#allocation1] ss:$4 sm:$0xff] %v51_v11  ;;  %v72_v20 = vadd.f32 %v70_v16, %v67_v18 }
  0x36   :  { %v74_v19 = vld.sshfl [vmem:[#allocation1 + $0x10] sm:$0xff pattern:$0x73625140] }
  0x37   :  { %77 = vst [vmem:[#allocation1] ss:$4 sm:$0xff] %v51_v11  ;;  %v76_v21 = vadd.f32 %v74_v19, %v72_v20 }
  0x3e   :  { %v78_v22 = vld.sshfl [vmem:[#allocation1 + $0x18] sm:$0xff pattern:$0x73625140] }
  0x3f   :  { %v80_v23 = vadd.f32 %v78_v22, %v76_v21 }
  0x41   :  { %81 = vst [vmem:[#allocation2] sm:$0x3] %v80_v23 }
  0x48   :  { %v85_v24 = vld [vmem:[#allocation2] sm:$0x3] }
  0x49   :  { %v87_v25 = vsel %vm86_vm0, %v85_v24, 0.0 }
  0x4a   :  { %88 = vadd.xlane.f32.xlu0 %v87_v25 }
  0xbd   :  { %v89_v26 = vpop.xlane.xlu0 %88 }
  0xbe   :  { %v90_v27 = vmul.f32 0.0009765625, %v89_v26 }
  0xc0   :  { %107 = vlog2.f32 %v90_v27 }
  0xc6   :  { %v108_v28 = vpop.eup %107 }
  0xc7   :  { %v92_v29 = vmul.f32 0.6931472, %v108_v28 }
  0xc9   :  { %v93_v30 = vmul.f32 0.4342945, %v92_v29 }
  0xcb   :  { %v94_v31 = vmul.f32 10.0, %v93_v30 }
  0xcd   :  { %v95_v32 = vsub.f32 6.0206003, %v94_v31 }
  0xcf   :  { %97 = vst.msk [vmem:[%s190_s2] sm:$0x3] %vm96_vm1, %v95_v32 }
  0xd0   :  { %102 = vsyncpa [#allocation4], 1 }
  0xd1   :  { %103 = vsyncpa [#allocation6], 1 }

</bundles_post_ra>
